<compile_context>
chip_gen: v7x
topology: tpu7x:2x2x1
jax: 0.10.0
libtpu: 0.0.40
codegen_flags: <defaults>
</compile_context>

<pallas_src>
import functools
import numpy as np

import jax
import jax.numpy as jnp
from jax.experimental import pallas as pl
from jax.experimental.pallas import tpu as pltpu


_VMEM_LIMIT = 32 * 1024 * 1024
_P1 = pltpu.CompilerParams(dimension_semantics=("parallel",),
                           vmem_limit_bytes=_VMEM_LIMIT)
_P2 = pltpu.CompilerParams(dimension_semantics=("parallel", "parallel"),
                           vmem_limit_bytes=_VMEM_LIMIT)


def _largest_divisor(total, cap, multiple_of=1):
    cap = max(1, min(cap, total))
    for t in range(cap, 0, -1):
        if total % t == 0 and t % multiple_of == 0:
            return t
    return None


def _m_tiling(M, cap):
    """Pick an M tile that divides M (avoids pad/slice HBM round trips)."""
    if M <= cap:
        return M, M, 1
    d = _largest_divisor(M, cap, 8)
    if d is not None and d >= 64:
        return d, M, M // d
    # fallback (ragged / prime M): pad path
    grid_m = -(-M // cap)
    return cap, grid_m * cap, grid_m


# ----------------------------------------------------------------------------
# Pallas kernels
# ----------------------------------------------------------------------------

def _linear_kernel(x_ref, w_ref, bias_ref, o_ref):
    y = jnp.dot(x_ref[...].astype(jnp.bfloat16), w_ref[...],
                preferred_element_type=jnp.float32)
    o_ref[...] = (y + bias_ref[...]).astype(o_ref.dtype)


def _ln_linear_kernel(x_ref, g_ref, b_ref, w_ref, bias_ref, o_ref):
    x = x_ref[...]                                        # (TM, K) f32
    mu = jnp.mean(x, axis=-1, keepdims=True)
    var = jnp.mean(jnp.square(x - mu), axis=-1, keepdims=True)
    xn = (x - mu) * jax.lax.rsqrt(var + 1e-5) * g_ref[...] + b_ref[...]
    y = jnp.dot(xn.astype(jnp.bfloat16), w_ref[...],
                preferred_element_type=jnp.float32)
    o_ref[...] = (y + bias_ref[...]).astype(o_ref.dtype)


def _ln_qkvq_kernel(x_ref, g_ref, b_ref, wqkv_ref, bqkv_ref, wq_ref, bq_ref,
                    qkv_ref, q_ref):
    """LayerNorm fused with the wqkv (bf16 out) and wq (f32 out) projections."""
    x = x_ref[...]                                        # (TM, K) f32
    mu = jnp.mean(x, axis=-1, keepdims=True)
    var = jnp.mean(jnp.square(x - mu), axis=-1, keepdims=True)
    xn = (x - mu) * jax.lax.rsqrt(var + 1e-5) * g_ref[...] + b_ref[...]
    xb = xn.astype(jnp.bfloat16)
    y1 = jnp.dot(xb, wqkv_ref[...], preferred_element_type=jnp.float32)
    qkv_ref[...] = (y1 + bqkv_ref[...]).astype(qkv_ref.dtype)   # bf16 store
    y2 = jnp.dot(xb, wq_ref[...], preferred_element_type=jnp.float32)
    q_ref[...] = y2 + bq_ref[...]                               # f32 store


def pallas_linear(x, w_bf16, bias, out_dtype=jnp.float32, tm=512):
    """x: (..., K) @ w: (K, N) + bias: (1, N) -> (..., N).  Weight is bf16."""
    lead = x.shape[:-1]
    K = x.shape[-1]
    N = w_bf16.shape[1]
    M = int(np.prod(lead)) if lead else 1
    TM, Mp, grid_m = _m_tiling(M, tm)
    x2 = x.reshape(M, K)
    if Mp != M:
        x2 = jnp.pad(x2, ((0, Mp - M), (0, 0)))
    out = pl.pallas_call(
        _linear_kernel,
        grid=(grid_m,),
        in_specs=[pl.BlockSpec((TM, K), lambda i: (i, 0)),
                  pl.BlockSpec((K, N), lambda i: (0, 0)),
                  pl.BlockSpec((1, N), lambda i: (0, 0))],
        out_specs=pl.BlockSpec((TM, N), lambda i: (i, 0)),
        out_shape=jax.ShapeDtypeStruct((Mp, N), out_dtype),
        compiler_params=_P1,
    )(x2, w_bf16, bias)
    if Mp != M:
        out = out[:M]
    return out.reshape(lead + (N,))


def pallas_ln_linear(x, gamma, beta, w_bf16, bias, out_dtype=jnp.float32, tm=512):
    """LayerNorm(x) @ w + bias, fused."""
    lead = x.shape[:-1]
    K = x.shape[-1]
    N = w_bf16.shape[1]
    M = int(np.prod(lead)) if lead else 1
    TM, Mp, grid_m = _m_tiling(M, tm)
    x2 = x.reshape(M, K)
    if Mp != M:
        x2 = jnp.pad(x2, ((0, Mp - M), (0, 0)))
    out = pl.pallas_call(
        _ln_linear_kernel,
        grid=(grid_m,),
        in_specs=[pl.BlockSpec((TM, K), lambda i: (i, 0)),
                  pl.BlockSpec((1, K), lambda i: (0, 0)),
                  pl.BlockSpec((1, K), lambda i: (0, 0)),
                  pl.BlockSpec((K, N), lambda i: (0, 0)),
                  pl.BlockSpec((1, N), lambda i: (0, 0))],
        out_specs=pl.BlockSpec((TM, N), lambda i: (i, 0)),
        out_shape=jax.ShapeDtypeStruct((Mp, N), out_dtype),
        compiler_params=_P1,
    )(x2, gamma, beta, w_bf16, bias)
    if Mp != M:
        out = out[:M]
    return out.reshape(lead + (N,))


def pallas_ln_qkvq(x, gamma, beta, wqkv, bqkv, wq, bq, tm=512):
    """norm1 fused with [wqkv -> bf16 out] and [wq -> f32 out]."""
    lead = x.shape[:-1]
    K = x.shape[-1]
    N1 = wqkv.shape[1]
    N2 = wq.shape[1]
    M = int(np.prod(lead)) if lead else 1
    TM, Mp, grid_m = _m_tiling(M, tm)
    x2 = x.reshape(M, K)
    if Mp != M:
        x2 = jnp.pad(x2, ((0, Mp - M), (0, 0)))
    qkv, qred = pl.pallas_call(
        _ln_qkvq_kernel,
        grid=(grid_m,),
        in_specs=[pl.BlockSpec((TM, K), lambda i: (i, 0)),
                  pl.BlockSpec((1, K), lambda i: (0, 0)),
                  pl.BlockSpec((1, K), lambda i: (0, 0)),
                  pl.BlockSpec((K, N1), lambda i: (0, 0)),
                  pl.BlockSpec((1, N1), lambda i: (0, 0)),
                  pl.BlockSpec((K, N2), lambda i: (0, 0)),
                  pl.BlockSpec((1, N2), lambda i: (0, 0))],
        out_specs=(pl.BlockSpec((TM, N1), lambda i: (i, 0)),
                   pl.BlockSpec((TM, N2), lambda i: (i, 0))),
        out_shape=(jax.ShapeDtypeStruct((Mp, N1), jnp.bfloat16),
                   jax.ShapeDtypeStruct((Mp, N2), jnp.float32)),
        compiler_params=_P1,
    )(x2, gamma, beta, wqkv, bqkv, wq, bq)
    if Mp != M:
        qkv, qred = qkv[:M], qred[:M]
    return qkv.reshape(lead + (N1,)), qred.reshape(lead + (N2,))


def _atd_ca_kernel(q_ref, k_ref, v_ref, s_ref, o_ref, st_ref):
    q = q_ref[0]                                          # (TN, rc) f32
    k = k_ref[0]                                          # (m, rc)  f32
    v = v_ref[0]                                          # (m, c)   bf16
    # F.normalize: x / max(||x||, 1e-12) == x * rsqrt(max(sum(x^2), 1e-24))
    qn = q * jax.lax.rsqrt(jnp.maximum(jnp.sum(q * q, -1, keepdims=True), 1e-24))
    kn = k * jax.lax.rsqrt(jnp.maximum(jnp.sum(k * k, -1, keepdims=True), 1e-24))
    attn = jnp.einsum('nr,mr->nm', qn.astype(jnp.bfloat16), kn.astype(jnp.bfloat16),
                      preferred_element_type=jnp.float32)  # (TN, m)
    attn = attn * s_ref[...]                              # (1, m) broadcast
    attn = attn - jnp.max(attn, -1, keepdims=True)
    e = jnp.exp(attn)
    p = e * pl.reciprocal(jnp.sum(e, -1, keepdims=True), approx=True)
    st_ref[0] = p.T.astype(st_ref.dtype)                  # (m, TN) bf16
    o_ref[0] = jnp.dot(p.astype(jnp.bfloat16), v,
                       preferred_element_type=jnp.float32)


def pallas_atd_ca(q, k, v_bf16, scale_row, tn_cap=2048):
    """ATD cross attention.  Returns (x_atd f32 (b,n,c), simT bf16 (b,m,n))."""
    b, n, rc = q.shape
    _, m, _ = k.shape
    c = v_bf16.shape[-1]
    if n <= tn_cap:
        TN = n
    else:
        d = _largest_divisor(n, tn_cap, 128)   # TN lands in lane dim of simT
        TN = d if d else n
    return pl.pallas_call(
        _atd_ca_kernel,
        grid=(b, n // TN),
        in_specs=[pl.BlockSpec((1, TN, rc), lambda i, j: (i, j, 0)),
                  pl.BlockSpec((1, m, rc), lambda i, j: (i, 0, 0)),
                  pl.BlockSpec((1, m, c), lambda i, j: (i, 0, 0)),
                  pl.BlockSpec((1, m), lambda i, j: (0, 0))],
        out_specs=(pl.BlockSpec((1, TN, c), lambda i, j: (i, j, 0)),
                   pl.BlockSpec((1, m, TN), lambda i, j: (i, 0, j))),
        out_shape=(jax.ShapeDtypeStruct((b, n, c), jnp.float32),
                   jax.ShapeDtypeStruct((b, m, n), jnp.bfloat16)),
        compiler_params=_P2,
    )(q, k, v_bf16, scale_row)


def _win_attn_body(q, k, v, rpb, mask, scale, nh, o_ref):
    G, N, hd = q.shape
    wt = G // nh
    attn = jnp.einsum('gnd,gmd->gnm', q, k,
                      preferred_element_type=jnp.float32) * scale
    attn = attn.reshape(wt, nh, N, N) + rpb[None]          # per-head bias
    if mask is not None:
        attn = attn + mask[:, None]                        # per-window mask
    attn = attn - jnp.max(attn, -1, keepdims=True)
    e = jnp.exp(attn)
    p = e * pl.reciprocal(jnp.sum(e, -1, keepdims=True), approx=True)
    p = p.reshape(G, N, N).astype(jnp.bfloat16)
    out = jnp.einsum('gnm,gmd->gnd', p, v,
                     preferred_element_type=jnp.float32)   # (G, N, hd)
    out = out.reshape(wt, nh, N, hd)
    # merge heads -> lane-dense (wt, N, c) store (head-major channel order)
    o_ref[0] = jnp.concatenate([out[:, hh] for hh in range(nh)],
                               axis=-1).astype(o_ref.dtype)


def _win_attn_kernel_nomask(q_ref, k_ref, v_ref, rpb_ref, o_ref, *, scale, nh):
    _win_attn_body(q_ref[0], k_ref[0], v_ref[0], rpb_ref[...], None,
                   scale, nh, o_ref)


def _win_attn_kernel_mask(q_ref, k_ref, v_ref, rpb_ref, mask_ref, o_ref,
                          *, scale, nh):
    _win_attn_body(q_ref[0], k_ref[0], v_ref[0], rpb_ref[...], mask_ref[...],
                   scale, nh, o_ref)


def pallas_window_attn(q, k, v, rpb, mask, scale, nh, wt_cap=4):
    """q/k/v: (B, nw*nh, N, hd) bf16; rpb: (nh, N, N); mask: (nw, N, N) or None.
    Returns (B, nw, N, c) bf16 with heads merged back to channels."""
    B, G, N, hd = q.shape
    nw = G // nh
    c = nh * hd
    WT = _largest_divisor(nw, min(wt_cap, nw)) or nw
    in_specs = [pl.BlockSpec((1, WT * nh, N, hd), lambda i, j: (i, j, 0, 0)),
                pl.BlockSpec((1, WT * nh, N, hd), lambda i, j: (i, j, 0, 0)),
                pl.BlockSpec((1, WT * nh, N, hd), lambda i, j: (i, j, 0, 0)),
                pl.BlockSpec((nh, N, N), lambda i, j: (0, 0, 0))]
    args = [q, k, v, rpb]
    if mask is not None:
        in_specs.append(pl.BlockSpec((WT, N, N), lambda i, j: (j, 0, 0)))
        args.append(mask)
        kern = functools.partial(_win_attn_kernel_mask, scale=scale, nh=nh)
    else:
        kern = functools.partial(_win_attn_kernel_nomask, scale=scale, nh=nh)
    return pl.pallas_call(
        kern,
        grid=(B, nw // WT),
        in_specs=in_specs,
        out_specs=pl.BlockSpec((1, WT, N, c), lambda i, j: (i, j, 0, 0)),
        out_shape=jax.ShapeDtypeStruct((B, nw, N, c), jnp.bfloat16),
        compiler_params=_P2,
    )(*args)


def _grp_attn_kernel(q_ref, k_ref, v_ref, ls_ref, o_ref, *, nh):
    q = q_ref[0]                                          # (GT*nh, gs, hd) bf16
    k = k_ref[0]
    v = v_ref[0]
    G, N, hd = q.shape
    gt = G // nh
    attn = jnp.einsum('gnd,gmd->gnm', q, k,
                      preferred_element_type=jnp.float32)
    attn = attn * ls_ref[0]                               # scalar from SMEM
    attn = attn - jnp.max(attn, -1, keepdims=True)
    e = jnp.exp(attn)
    p = (e * pl.reciprocal(jnp.sum(e, -1, keepdims=True), approx=True)
         ).astype(jnp.bfloat16)
    out = jnp.einsum('gnm,gmd->gnd', p, v,
                     preferred_element_type=jnp.float32)
    out = out.reshape(gt, nh, N, hd)
    o_ref[0] = jnp.concatenate([out[:, hh] for hh in range(nh)],
                               axis=-1).astype(o_ref.dtype)


def pallas_group_attn(q, k, v, logit_scale, nh, gt_cap=4):
    """q/k/v: (B, ng*nh, gs, hd) bf16; logit_scale: (1,) f32 (SMEM scalar).
    Returns (B, ng, gs, c) bf16 with heads merged to channels."""
    B, G, gs, hd = q.shape
    ng = G // nh
    c = nh * hd
    GT = _largest_divisor(ng, min(gt_cap, ng)) or ng
    return pl.pallas_call(
        functools.partial(_grp_attn_kernel, nh=nh),
        grid=(B, ng // GT),
        in_specs=[pl.BlockSpec((1, GT * nh, gs, hd), lambda i, j: (i, j, 0, 0)),
                  pl.BlockSpec((1, GT * nh, gs, hd), lambda i, j: (i, j, 0, 0)),
                  pl.BlockSpec((1, GT * nh, gs, hd), lambda i, j: (i, j, 0, 0)),
                  pl.BlockSpec(memory_space=pltpu.MemorySpace.SMEM)],
        out_specs=pl.BlockSpec((1, GT, gs, c), lambda i, j: (i, j, 0, 0)),
        out_shape=jax.ShapeDtypeStruct((B, ng, gs, c), jnp.bfloat16),
        compiler_params=_P2,
    )(q, k, v, logit_scale)


def _dwconv_kernel(x_ref, w_ref, b_ref, o_ref, *, ksize, H, W):
    wk = w_ref[...]                                       # (k*k, C)
    C = wk.shape[-1]
    n_acc = 4
    accs = [jnp.zeros((H, W, C), jnp.float32) for _ in range(n_acc)]
    t = 0
    for kh in range(ksize):
        for kw in range(ksize):
            patch = x_ref[0, kh:kh + H, kw:kw + W, :]
            accs[t % n_acc] = accs[t % n_acc] + patch * wk[kh * ksize + kw]
            t += 1
    acc = (accs[0] + accs[1]) + (accs[2] + accs[3])
    o_ref[0] = acc + b_ref[...]


def pallas_dwconv(x_hw, w, b, ksize):
    """Depthwise conv, NHWC, 'same' padding. w: (k*k, C), b: (1, C)."""
    # TODO(synk): tile over row blocks with a (k-1)-row halo (manual DMA) for large
    # resolutions so per-step blocks fit v7x's 64 MiB VMEM; per-image blocks are
    # fine at these sizes.
    bsz, H, W, C = x_hw.shape
    pad = (ksize - 1) // 2
    xp = jnp.pad(x_hw, ((0, 0), (pad, pad), (pad, pad), (0, 0)))
    Hp, Wp = H + 2 * pad, W + 2 * pad
    return pl.pallas_call(
        functools.partial(_dwconv_kernel, ksize=ksize, H=H, W=W),
        grid=(bsz,),
        in_specs=[pl.BlockSpec((1, Hp, Wp, C), lambda i: (i, 0, 0, 0)),
                  pl.BlockSpec((ksize * ksize, C), lambda i: (0, 0)),
                  pl.BlockSpec((1, C), lambda i: (0, 0))],
        out_specs=pl.BlockSpec((1, H, W, C), lambda i: (i, 0, 0, 0)),
        out_shape=jax.ShapeDtypeStruct((bsz, H, W, C), jnp.float32),
        compiler_params=_P1,
    )(xp, w, b)


def _td_update_kernel(st_ref, g_ref, bta_ref, x_ref, td_ref, sig_ref, o_ref):
    st = st_ref[0].astype(jnp.float32)                    # (m, n)
    mu = jnp.mean(st, -1, keepdims=True)
    var = jnp.mean(jnp.square(st - mu), -1, keepdims=True)
    xn = (st - mu) * jax.lax.rsqrt(var + 1e-5)            # InstanceNorm1d (eps=1e-5)
    xn = xn * g_ref[...] + bta_ref[...]                   # affine per-channel (m, 1)
    xn = xn - jnp.max(xn, -1, keepdims=True)
    e = jnp.exp(xn)
    p = e * pl.reciprocal(jnp.sum(e, -1, keepdims=True), approx=True)
    agg = jnp.dot(p.astype(jnp.bfloat16), x_ref[0].astype(jnp.bfloat16),
                  preferred_element_type=jnp.float32)     # (m, c)
    s = jax.nn.sigmoid(sig_ref[...])                      # (m, 1)
    o_ref[0] = s * td_ref[0] + (1.0 - s) * agg


def pallas_td_update(simT, gamma, beta, x, td, sigma):
    b, m, n = simT.shape
    c = x.shape[-1]
    return pl.pallas_call(
        _td_update_kernel,
        grid=(b,),
        in_specs=[pl.BlockSpec((1, m, n), lambda i: (i, 0, 0)),
                  pl.BlockSpec((m, 1), lambda i: (0, 0)),
                  pl.BlockSpec((m, 1), lambda i: (0, 0)),
                  pl.BlockSpec((1, n, c), lambda i: (i, 0, 0)),
                  pl.BlockSpec((1, m, c), lambda i: (i, 0, 0)),
                  pl.BlockSpec((m, 1), lambda i: (0, 0))],
        out_specs=pl.BlockSpec((1, m, c), lambda i: (i, 0, 0)),
        out_shape=jax.ShapeDtypeStruct((b, m, c), jnp.float32),
        compiler_params=_P1,
    )(simT, gamma, beta, x, td, sigma)


# ----------------------------------------------------------------------------
# Plain-JAX glue (window partition, masks, sort/gather, etc.)
# ----------------------------------------------------------------------------

def window_partition(x, ws):
    b, h, w, c = x.shape
    x = x.reshape(b, h // ws, ws, w // ws, ws, c)
    return jnp.transpose(x, (0, 1, 3, 2, 4, 5)).reshape(-1, ws, ws, c)


def window_reverse(windows, ws, h, w):
    b = windows.shape[0] // (h * w // ws // ws)
    x = windows.reshape(b, h // ws, w // ws, ws, ws, -1)
    return jnp.transpose(x, (0, 1, 3, 2, 4, 5)).reshape(b, h, w, -1)


def calc_rpi_sa(ws):
    coords = np.stack(np.meshgrid(np.arange(ws), np.arange(ws), indexing='ij'))
    flat = coords.reshape(2, -1)
    rel = flat[:, :, None] - flat[:, None, :]
    rel = rel.transpose(1, 2, 0).astype(np.int64)
    rel[:, :, 0] += ws - 1
    rel[:, :, 1] += ws - 1
    rel[:, :, 0] *= 2 * ws - 1
    return rel.sum(-1)                                    # (ws*ws, ws*ws)


def calc_attn_mask(h, w, ws, shift):
    img_mask = np.zeros((1, h, w, 1), np.float32)
    slices = (slice(0, -ws), slice(-ws, -shift), slice(-shift, None))
    cnt = 0
    for hs in slices:
        for wsl in slices:
            img_mask[:, hs, wsl, :] = cnt
            cnt += 1
    mw = img_mask.reshape(1, h // ws, ws, w // ws, ws, 1)
    mw = mw.transpose(0, 1, 3, 2, 4, 5).reshape(-1, ws * ws)
    am = mw[:, None, :] - mw[:, :, None]
    return np.where(am != 0, -100.0, 0.0).astype(np.float32)   # (nw, N, N)


def gelu_exact(x):
    # nn.GELU default (erf-based).
    # TODO(synk): move erf-based GELU inside the fused LN+fc1 kernel once erf
    # lowering is verified on all target generations.
    return jax.nn.gelu(x, approximate=False)


# ----------------------------------------------------------------------------
# ATD transformer layer / BasicBlock forward
# ----------------------------------------------------------------------------

def atd_layer_forward(x, td, x_size, p, cfg, attn_mask, is_last, shift_size):
    h, w = x_size
    b, n, c = x.shape
    nh = cfg['num_heads']
    hd = c // nh
    ws = cfg['window_size']
    m = cfg['num_tokens']
    rc = cfg['reducted_dim']
    c3 = 3 * c

    shortcut = x

    # ---- fused norm1 + wqkv (bf16 out) + wq (f32 out) ----
    qkv, q_red = pallas_ln_qkvq(x, p['norm1_g'], p['norm1_b'],
                                p['wqkv_w'], p['wqkv_b'], p['wq_w'], p['wq_b'])

    # ---- fused [wk | wv] projection of the token dictionary (tiny) ----
    kv = pallas_linear(td, p['wkv_w'], p['wkv_b'])        # (b, m, rc + c) f32
    k_red = kv[..., :rc]
    v_td = kv[..., rc:].astype(jnp.bfloat16)

    # ---- ATD-CA (token-dictionary cross attention) ----
    scale_row = (1.0 + jnp.clip(p['atd_scale'], 0.0, 1.0) * np.log(m)).reshape(1, m)
    x_atd, simT = pallas_atd_ca(q_red, k_red, v_td, scale_row)  # f32 (b,n,c), bf16 (b,m,n)

    # ---- AC-MSA (category-grouped self-attention) ----
    gs = min(n, cfg['category_size'])
    ng = (n + gs - 1) // gs
    pad_n = ng * gs - n
    tk_id = jnp.argmax(simT, axis=1)                      # (b, n)
    sort_idx = jnp.argsort(tk_id, axis=-1)
    inv_idx = jnp.argsort(sort_idx, axis=-1)              # inverse permutation
    shuffled = jnp.take_along_axis(
        qkv, jnp.broadcast_to(sort_idx[:, :, None], qkv.shape), axis=1)
    if pad_n > 0:
        tail = jnp.flip(shuffled[:, n - pad_n:n, :], axis=1)
        padded = jnp.concatenate([shuffled, tail], axis=1)
    else:
        padded = shuffled
    y = padded.reshape(b, ng, gs, 3, nh, hd)
    y = jnp.transpose(y, (3, 0, 1, 4, 2, 5))              # (3, b, ng, nh, gs, hd)
    qg = y[0].reshape(b, ng * nh, gs, hd)
    kg = y[1].reshape(b, ng * nh, gs, hd)
    vg = y[2].reshape(b, ng * nh, gs, hd)
    logit_scale = jnp.exp(jnp.minimum(p['logit_scale'], np.log(1.0 / 0.01)))
    y_aca = pallas_group_attn(qg, kg, vg, logit_scale, nh)   # (b, ng, gs, c) bf16
    y_aca = y_aca.reshape(b, ng * gs, c)[:, :n, :]
    x_aca = jnp.take_along_axis(
        y_aca, jnp.broadcast_to(inv_idx[:, :, None], y_aca.shape), axis=1)
    x_aca = pallas_linear(x_aca, p['aca_proj_w'], p['aca_proj_b'])

    # ---- (shifted) window attention ----
    qkv_img = qkv.reshape(b, h, w, c3)
    if shift_size > 0:
        shifted = jnp.roll(qkv_img, shift=(-shift_size, -shift_size), axis=(1, 2))
    else:
        shifted = qkv_img
    nw = (h // ws) * (w // ws)
    N = ws * ws
    xw = window_partition(shifted, ws).reshape(b, nw, N, 3, nh, hd)
    xw = jnp.transpose(xw, (3, 0, 1, 4, 2, 5))            # (3, b, nw, nh, N, hd)
    qw = xw[0].reshape(b, nw * nh, N, hd)
    kw_ = xw[1].reshape(b, nw * nh, N, hd)
    vw = xw[2].reshape(b, nw * nh, N, hd)
    ow = pallas_window_attn(qw, kw_, vw, p['rpb'], attn_mask,
                            hd ** -0.5, nh)               # (b, nw, N, c) bf16
    ow = pallas_linear(ow, p['win_proj_w'], p['win_proj_b'])   # (b, nw, N, c) f32
    attn_windows = ow.reshape(-1, ws, ws, c)
    shifted_x = window_reverse(attn_windows, ws, h, w)
    if shift_size > 0:
        attn_x = jnp.roll(shifted_x, shift=(shift_size, shift_size), axis=(1, 2))
    else:
        attn_x = shifted_x
    x_win = attn_x.reshape(b, n, c)

    x = shortcut + x_win + x_atd + x_aca

    # ---- ConvFFN (norm2 fused into fc1) ----
    y = gelu_exact(pallas_ln_linear(x, p['norm2_g'], p['norm2_b'],
                                    p['fc1_w'], p['fc1_b']))
    hid = y.shape[-1]
    y_img = y.reshape(b, h, w, hid)                       # NHWC
    y_dw = gelu_exact(pallas_dwconv(y_img, p['dw_w'], p['dw_b'],
                                    cfg['convffn_kernel_size'])).reshape(b, n, hid)
    y = y + y_dw
    y = pallas_linear(y, p['fc2_w'], p['fc2_b'])
    x = x + y

    # ---- token dictionary refresh ----
    if not is_last:
        td = pallas_td_update(simT, p['norm3_g'], p['norm3_b'], x, td, p['sigma'])
    return x, td


def basic_block_forward(x, x_size, params, block_params, cfg):
    b = x.shape[0]
    td = jnp.broadcast_to(block_params['td'][None],
                          (b,) + block_params['td'].shape)
    depth = len(block_params['layers'])
    for i, p in enumerate(block_params['layers']):
        shift = 0 if i % 2 == 0 else cfg['window_size'] // 2
        is_last = (i == depth - 1)
        attn_mask = params['attn_mask'] if shift > 0 else None
        x, td = atd_layer_forward(x, td, x_size, p, cfg, attn_mask, is_last, shift)
    # downsample is None in this configuration
    return x


# ----------------------------------------------------------------------------
# Deterministic parameter init (synthetic, shapes per module __init__).
# Weights feeding the MXU are pre-cast to bf16, biases / LN params pre-reshaped,
# and the relative-position bias is pre-gathered to (nh, N, N) once (hoisted).
# ----------------------------------------------------------------------------

def init_layer_params(key, cfg, is_last, rpi):
    c = cfg['dim']
    m = cfg['num_tokens']
    rc = cfg['reducted_dim']
    hid = int(c * cfg['mlp_ratio'])
    ks = cfg['convffn_kernel_size']
    nh = cfg['num_heads']
    ws = cfg['window_size']
    N = ws * ws
    keys = jax.random.split(key, 12)

    def nrm(k, shape, std=0.02):
        return jax.random.normal(k, shape, jnp.float32) * std

    wk_w = nrm(keys[4], (c, rc))
    wv_w = nrm(keys[5], (c, c))
    rpb_table = nrm(keys[1], ((2 * ws - 1) * (2 * ws - 1), nh))
    rpb = jnp.transpose(rpb_table[rpi.reshape(-1)].reshape(N, N, nh), (2, 0, 1))

    p = {
        'norm1_g': jnp.ones((1, c), jnp.float32), 'norm1_b': jnp.zeros((1, c), jnp.float32),
        'norm2_g': jnp.ones((1, c), jnp.float32), 'norm2_b': jnp.zeros((1, c), jnp.float32),
        'wqkv_w': nrm(keys[0], (c, 3 * c)).astype(jnp.bfloat16),
        'wqkv_b': jnp.zeros((1, 3 * c), jnp.float32),
        'wq_w': nrm(keys[3], (c, rc)).astype(jnp.bfloat16),
        'wq_b': jnp.zeros((1, rc), jnp.float32),
        # fused [wk | wv] on the token dictionary
        'wkv_w': jnp.concatenate([wk_w, wv_w], axis=1).astype(jnp.bfloat16),
        'wkv_b': jnp.zeros((1, rc + c), jnp.float32),
        'rpb': rpb,                                      # (nh, N, N) pre-gathered
        'win_proj_w': nrm(keys[2], (c, c)).astype(jnp.bfloat16),
        'win_proj_b': jnp.zeros((1, c), jnp.float32),
        'atd_scale': jnp.full((m,), 0.5, jnp.float32),
        'aca_proj_w': nrm(keys[6], (c, c)).astype(jnp.bfloat16),
        'aca_proj_b': jnp.zeros((1, c), jnp.float32),
        'logit_scale': jnp.full((1,), np.log(10.0), jnp.float32),
        'fc1_w': nrm(keys[7], (c, hid)).astype(jnp.bfloat16),
        'fc1_b': jnp.zeros((1, hid), jnp.float32),
        'fc2_w': nrm(keys[8], (hid, c)).astype(jnp.bfloat16),
        'fc2_b': jnp.zeros((1, c), jnp.float32),
        # depthwise conv weight stored as (k*k, hidden)  (torch shape: (hidden,1,k,k))
        'dw_w': nrm(keys[9], (ks * ks, hid)), 'dw_b': jnp.zeros((1, hid), jnp.float32),
    }
    if not is_last:
        p['norm3_g'] = jnp.ones((m, 1), jnp.float32)
        p['norm3_b'] = jnp.zeros((m, 1), jnp.float32)
        p['sigma'] = jnp.zeros((m, 1), jnp.float32)
    return p


# ----------------------------------------------------------------------------

if __name__ == "__main__":
    cfg = dict(
        dim=32, num_heads=4, window_size=4, category_size=24,
        num_tokens=16, reducted_dim=4, convffn_kernel_size=5,
        mlp_ratio=2.0, depth=2, input_resolution=(8, 8),
    )
    h, w = cfg['input_resolution']
    b, n, c = 2, h * w, cfg['dim']

    rpi = jnp.asarray(calc_rpi_sa(cfg['window_size']), dtype=jnp.int32)

    key = jax.random.PRNGKey(0)
    keys = jax.random.split(key, 2 + cfg['depth'])
    x = jax.random.normal(keys[0], (b, n, c), jnp.float32)
    block_params = {
        'td': jax.random.normal(keys[1], (cfg['num_tokens'], c), jnp.float32),
        'layers': [init_layer_params(keys[2 + i], cfg, i == cfg['depth'] - 1, rpi)
                   for i in range(cfg['depth'])],
    }
    params = {
        'attn_mask': jnp.asarray(
            calc_attn_mask(h, w, cfg['window_size'], cfg['window_size'] // 2)),
    }

    out = basic_block_forward(x, (h, w), params, block_params, cfg)
    out = jax.block_until_ready(out)
    assert out.shape == (b, n, c), out.shape
    assert bool(jnp.all(jnp.isfinite(out)))
    print("KERNEL_OK")
</pallas_src>

<mosaic_0001>
module attributes {stable_mosaic.version = 11 : i64} {
  func.func @_ln_qkvq_kernel(%arg0: i32, %arg1: memref<128x32xf32, #tpu.memory_space<vmem>>, %arg2: memref<1x32xf32, #tpu.memory_space<vmem>>, %arg3: memref<1x32xf32, #tpu.memory_space<vmem>>, %arg4: memref<32x96xbf16, #tpu.memory_space<vmem>>, %arg5: memref<1x96xf32, #tpu.memory_space<vmem>>, %arg6: memref<32x4xbf16, #tpu.memory_space<vmem>>, %arg7: memref<1x4xf32, #tpu.memory_space<vmem>>, %arg8: memref<128x96xbf16, #tpu.memory_space<vmem>>, %arg9: memref<128x4xf32, #tpu.memory_space<vmem>>) attributes {dimension_semantics = [#tpu.dimension_semantics<parallel>], iteration_bounds = array<i64: 1>, scalar_prefetch = 0 : i64, scratch_operands = 0 : i64, tpu.core_type = #tpu.core_type<tc>, window_params = [{transform_indices = @transform_0, window_bounds = array<i64: 128, 32>}, {pipeline_mode = #tpu.pipeline_mode<synchronous>, transform_indices = @transform_1, window_bounds = array<i64: 1, 32>}, {pipeline_mode = #tpu.pipeline_mode<synchronous>, transform_indices = @transform_2, window_bounds = array<i64: 1, 32>}, {pipeline_mode = #tpu.pipeline_mode<synchronous>, transform_indices = @transform_3, window_bounds = array<i64: 32, 96>}, {pipeline_mode = #tpu.pipeline_mode<synchronous>, transform_indices = @transform_4, window_bounds = array<i64: 1, 96>}, {pipeline_mode = #tpu.pipeline_mode<synchronous>, transform_indices = @transform_5, window_bounds = array<i64: 32, 4>}, {pipeline_mode = #tpu.pipeline_mode<synchronous>, transform_indices = @transform_6, window_bounds = array<i64: 1, 4>}, {transform_indices = @transform_7, window_bounds = array<i64: 128, 96>}, {transform_indices = @transform_8, window_bounds = array<i64: 128, 4>}]} {
    %c0 = arith.constant 0 : index
    %c0_0 = arith.constant 0 : index
    %0 = vector.load %arg1[%c0, %c0_0] : memref<128x32xf32, #tpu.memory_space<vmem>>, vector<128x32xf32>
    %cst = arith.constant dense<0.000000e+00> : vector<128xf32>
    %1 = vector.multi_reduction <add>, %0, %cst [1] : vector<128x32xf32> to vector<128xf32>
    %2 = vector.shape_cast %1 : vector<128xf32> to vector<128x1xf32>
    %cst_1 = arith.constant 3.200000e+01 : f32
    %3 = vector.broadcast %cst_1 : f32 to vector<128x1xf32>
    %4 = arith.divf %2, %3 : vector<128x1xf32>
    %5 = vector.broadcast %4 : vector<128x1xf32> to vector<128x32xf32>
    %6 = arith.subf %0, %5 : vector<128x32xf32>
    %7 = arith.mulf %6, %6 : vector<128x32xf32>
    %cst_2 = arith.constant dense<0.000000e+00> : vector<128xf32>
    %8 = vector.multi_reduction <add>, %7, %cst_2 [1] : vector<128x32xf32> to vector<128xf32>
    %9 = vector.shape_cast %8 : vector<128xf32> to vector<128x1xf32>
    %cst_3 = arith.constant 3.200000e+01 : f32
    %10 = vector.broadcast %cst_3 : f32 to vector<128x1xf32>
    %11 = arith.divf %9, %10 : vector<128x1xf32>
    %12 = vector.broadcast %4 : vector<128x1xf32> to vector<128x32xf32>
    %13 = arith.subf %0, %12 : vector<128x32xf32>
    %cst_4 = arith.constant 9.99999974E-6 : f32
    %14 = vector.broadcast %cst_4 : f32 to vector<128x1xf32>
    %15 = arith.addf %11, %14 : vector<128x1xf32>
    %16 = math.rsqrt %15 : vector<128x1xf32>
    %17 = vector.broadcast %16 : vector<128x1xf32> to vector<128x32xf32>
    %18 = arith.mulf %13, %17 : vector<128x32xf32>
    %c0_5 = arith.constant 0 : index
    %c0_6 = arith.constant 0 : index
    %19 = vector.load %arg2[%c0_5, %c0_6] : memref<1x32xf32, #tpu.memory_space<vmem>>, vector<1x32xf32>
    %20 = vector.broadcast %19 : vector<1x32xf32> to vector<128x32xf32>
    %21 = arith.mulf %18, %20 : vector<128x32xf32>
    %c0_7 = arith.constant 0 : index
    %c0_8 = arith.constant 0 : index
    %22 = vector.load %arg3[%c0_7, %c0_8] : memref<1x32xf32, #tpu.memory_space<vmem>>, vector<1x32xf32>
    %23 = vector.broadcast %22 : vector<1x32xf32> to vector<128x32xf32>
    %24 = arith.addf %21, %23 : vector<128x32xf32>
    %25 = arith.truncf %24 : vector<128x32xf32> to vector<128x32xbf16>
    %c0_9 = arith.constant 0 : index
    %c0_10 = arith.constant 0 : index
    %26 = vector.load %arg4[%c0_9, %c0_10] : memref<32x96xbf16, #tpu.memory_space<vmem>>, vector<32x96xbf16>
    %cst_11 = arith.constant dense<0.000000e+00> : vector<128x96xf32>
    %27 = tpu.matmul %25, %26, %cst_11 {dimension_numbers = #tpu.dot_dimension_numbers<[1], [0], [0], [1], [0, 0, 1, 1], [], []>} : vector<128x32xbf16>, vector<32x96xbf16>, vector<128x96xf32> -> vector<128x96xf32>
    %c0_12 = arith.constant 0 : index
    %c0_13 = arith.constant 0 : index
    %28 = vector.load %arg5[%c0_12, %c0_13] : memref<1x96xf32, #tpu.memory_space<vmem>>, vector<1x96xf32>
    %29 = vector.broadcast %28 : vector<1x96xf32> to vector<128x96xf32>
    %30 = arith.addf %27, %29 : vector<128x96xf32>
    %31 = arith.truncf %30 : vector<128x96xf32> to vector<128x96xbf16>
    %c0_14 = arith.constant 0 : index
    %c0_15 = arith.constant 0 : index
    %32 = vector.load %arg8[%c0_14, %c0_15] : memref<128x96xbf16, #tpu.memory_space<vmem>>, vector<128x96xbf16>
    tpu.vector_store %arg8[%c0_14, %c0_15], %31 {strides = array<i32>} : memref<128x96xbf16, #tpu.memory_space<vmem>>, vector<128x96xbf16>,
    %c0_16 = arith.constant 0 : index
    %c0_17 = arith.constant 0 : index
    %33 = vector.load %arg6[%c0_16, %c0_17] : memref<32x4xbf16, #tpu.memory_space<vmem>>, vector<32x4xbf16>
    %cst_18 = arith.constant dense<0.000000e+00> : vector<128x4xf32>
    %34 = tpu.matmul %25, %33, %cst_18 {dimension_numbers = #tpu.dot_dimension_numbers<[1], [0], [0], [1], [0, 0, 1, 1], [], []>} : vector<128x32xbf16>, vector<32x4xbf16>, vector<128x4xf32> -> vector<128x4xf32>
    %c0_19 = arith.constant 0 : index
    %c0_20 = arith.constant 0 : index
    %35 = vector.load %arg7[%c0_19, %c0_20] : memref<1x4xf32, #tpu.memory_space<vmem>>, vector<1x4xf32>
    %36 = vector.broadcast %35 : vector<1x4xf32> to vector<128x4xf32>
    %37 = arith.addf %34, %36 : vector<128x4xf32>
    %c0_21 = arith.constant 0 : index
    %c0_22 = arith.constant 0 : index
    %38 = vector.load %arg9[%c0_21, %c0_22] : memref<128x4xf32, #tpu.memory_space<vmem>>, vector<128x4xf32>
    tpu.vector_store %arg9[%c0_21, %c0_22], %37 {strides = array<i32>} : memref<128x4xf32, #tpu.memory_space<vmem>>, vector<128x4xf32>,
    return
  }
  func.func @transform_0(%arg0: i32) -> (i32, i32) {
    %c0_i32 = arith.constant 0 : i32
    %c0_i32_0 = arith.constant 0 : i32
    return %arg0, %c0_i32 : i32, i32
  }
  func.func @transform_1(%arg0: i32) -> (i32, i32) {
    %c0_i32 = arith.constant 0 : i32
    %c0_i32_0 = arith.constant 0 : i32
    %c0_i32_1 = arith.constant 0 : i32
    return %c0_i32, %c0_i32_0 : i32, i32
  }
  func.func @transform_2(%arg0: i32) -> (i32, i32) {
    %c0_i32 = arith.constant 0 : i32
    %c0_i32_0 = arith.constant 0 : i32
    %c0_i32_1 = arith.constant 0 : i32
    return %c0_i32, %c0_i32_0 : i32, i32
  }
  func.func @transform_3(%arg0: i32) -> (i32, i32) {
    %c0_i32 = arith.constant 0 : i32
    %c0_i32_0 = arith.constant 0 : i32
    %c0_i32_1 = arith.constant 0 : i32
    return %c0_i32, %c0_i32_0 : i32, i32
  }
  func.func @transform_4(%arg0: i32) -> (i32, i32) {
    %c0_i32 = arith.constant 0 : i32
    %c0_i32_0 = arith.constant 0 : i32
    %c0_i32_1 = arith.constant 0 : i32
    return %c0_i32, %c0_i32_0 : i32, i32
  }
  func.func @transform_5(%arg0: i32) -> (i32, i32) {
    %c0_i32 = arith.constant 0 : i32
    %c0_i32_0 = arith.constant 0 : i32
    %c0_i32_1 = arith.constant 0 : i32
    return %c0_i32, %c0_i32_0 : i32, i32
  }
  func.func @transform_6(%arg0: i32) -> (i32, i32) {
    %c0_i32 = arith.constant 0 : i32
    %c0_i32_0 = arith.constant 0 : i32
    %c0_i32_1 = arith.constant 0 : i32
    return %c0_i32, %c0_i32_0 : i32, i32
  }
  func.func @transform_7(%arg0: i32) -> (i32, i32) {
    %c0_i32 = arith.constant 0 : i32
    %c0_i32_0 = arith.constant 0 : i32
    return %arg0, %c0_i32 : i32, i32
  }
  func.func @transform_8(%arg0: i32) -> (i32, i32) {
    %c0_i32 = arith.constant 0 : i32
    %c0_i32_0 = arith.constant 0 : i32
    return %arg0, %c0_i32 : i32, i32
  }
}

</mosaic_0001>

<bundles_post_ra>
// kernel: tpu_custom_call.1
= control target key start
LH: loop header
LB: loop body
LE: loop exit
PB: predicated region body
PF: predicated region fallthrough
CT: control target
= control target key end

     0   :  { %vm45_vm0 = vcmask 261120   ;;  %vm654_vm1 = vcmask 31744   ;;  %vm517_vm2 = vcmask 781312   ;;  %s1316_s0 = inlined_call_operand.vmem [shape: f32[128,32], index: 0, kind: input, shape index: {}]   ;;  %s1317_s3 = inlined_call_operand.vmem [shape: bf16[32,96], index: 3, kind: input, shape index: {}]   ;;  %s1318_s5 = inlined_call_operand.vmem [shape: bf16[32,4], index: 5, kind: input, shape index: {}]   ;;  %s1319_s1 = inlined_call_operand.vmem [shape: f32[1,32], index: 1, kind: input, shape index: {}]   ;;  %s1320_s2 = inlined_call_operand.vmem [shape: f32[1,32], index: 2, kind: input, shape index: {}]   ;;  %s1321_s4 = inlined_call_operand.vmem [shape: f32[1,96], index: 4, kind: input, shape index: {}]   ;;  %s1322_s6 = inlined_call_operand.vmem [shape: f32[1,4], index: 6, kind: input, shape index: {}]   ;;  %s1323_s8 = inlined_call_operand.vmem [shape: f32[128,4], index: 8, kind: output, shape index: {1}]   ;;  %s1324_s7 = inlined_call_operand.vmem [shape: bf16[128,96], index: 7, kind: output, shape index: {0}]  }
   0x1   :  { %v29_v0 = vld [vmem:[%s1316_s0] sm:$0xff]  ;;  %v31_v1 = vld [vmem:[%s1316_s0 + $0x10] sm:$0xff]  ;;  %v30_v2 = vld [vmem:[%s1316_s0 + $0x8] sm:$0xff] }
   0x2   :  { %v46_v3 = vsel %vm45_vm0, %v29_v0, 0.0  ;;  %v52_v4 = vsel %vm45_vm0, %v31_v1, 0.0  ;;  %v32_v5 = vld [vmem:[%s1316_s0 + $0x18] sm:$0xff]  ;;  %v49_v6 = vsel %vm45_vm0, %v30_v2, 0.0  ;;  %v33_v8 = vld [vmem:[%s1316_s0 + $0x20] sm:$0xff]  ;;  %v34_v9 = vld [vmem:[%s1316_s0 + $0x28] sm:$0xff] }
   0x3   :  { %47 = vadd.xlane.f32.xlu0 %v46_v3  ;;  %53 = vadd.xlane.f32.xlu1 %v52_v4  ;;  %v55_v7 = vsel %vm45_vm0, %v32_v5, 0.0  ;;  %v58_v10 = vsel %vm45_vm0, %v33_v8, 0.0  ;;  %v61_v11 = vsel %vm45_vm0, %v34_v9, 0.0  ;;  %v903_v12 = vld [vmem:[%s1316_s0 + $0x30] sm:$0xff]  ;;  %v908_v13 = vld [vmem:[%s1316_s0 + $0x38] sm:$0xff]  ;;  %v917_v16 = vld [vmem:[%s1316_s0 + $0x40] sm:$0xff] }
   0x4   :  { %v64_v14 = vsel %vm45_vm0, %v903_v12, 0.0  ;;  %v67_v15 = vsel %vm45_vm0, %v908_v13, 0.0  ;;  %v922_v17 = vld [vmem:[%s1316_s0 + $0x48] sm:$0xff]  ;;  %v70_v18 = vsel %vm45_vm0, %v917_v16, 0.0  ;;  %v931_v20 = vld [vmem:[%s1316_s0 + $0x50] sm:$0xff]  ;;  %v936_v21 = vld [vmem:[%s1316_s0 + $0x58] sm:$0xff] }
   0x5   :  { %v73_v19 = vsel %vm45_vm0, %v922_v17, 0.0  ;;  %v76_v22 = vsel %vm45_vm0, %v931_v20, 0.0  ;;  %v79_v23 = vsel %vm45_vm0, %v936_v21, 0.0  ;;  %v945_v24 = vld [vmem:[%s1316_s0 + $0x60] sm:$0xff]  ;;  %v950_v25 = vld [vmem:[%s1316_s0 + $0x68] sm:$0xff]  ;;  %v959_v28 = vld [vmem:[%s1316_s0 + $0x70] sm:$0xff] }
   0x6   :  { %v82_v26 = vsel %vm45_vm0, %v945_v24, 0.0  ;;  %v85_v27 = vsel %vm45_vm0, %v950_v25, 0.0  ;;  %v964_v29 = vld [vmem:[%s1316_s0 + $0x78] sm:$0xff]  ;;  %v88_v30 = vsel %vm45_vm0, %v959_v28, 0.0 }
   0x7   :  { %50 = vadd.xlane.f32.xlu0 %v49_v6  ;;  %56 = vadd.xlane.f32.xlu1 %v55_v7  ;;  %v91_v31 = vsel %vm45_vm0, %v964_v29, 0.0 }
   0xb   :  { %59 = vadd.xlane.f32.xlu0 %v58_v10  ;;  %62 = vadd.xlane.f32.xlu1 %v61_v11 }
   0xf   :  { %65 = vadd.xlane.f32.xlu0 %v64_v14  ;;  %68 = vadd.xlane.f32.xlu1 %v67_v15 }
  0x13   :  { %71 = vadd.xlane.f32.xlu0 %v70_v18  ;;  %74 = vadd.xlane.f32.xlu1 %v73_v19 }
  0x17   :  { %77 = vadd.xlane.f32.xlu0 %v76_v22  ;;  %80 = vadd.xlane.f32.xlu1 %v79_v23 }
  0x1b   :  { %83 = vadd.xlane.f32.xlu0 %v82_v26  ;;  %86 = vadd.xlane.f32.xlu1 %v85_v27 }
  0x1f   :  { %89 = vadd.xlane.f32.xlu0 %v88_v30  ;;  %92 = vadd.xlane.f32.xlu1 %v91_v31 }
  0x90   :  { %v48_v32 = vpop.xlane.xlu0 %47  ;;  %v54_v33 = vpop.xlane.xlu1 %53 }
  0x91   :  { %v95_v34 = vmul.f32 0.03125, %v48_v32  ;;  %v97_v35 = vmul.f32 0.03125, %v54_v33 }
  0x93   :  { %v970_v36 = vsub.f32 %v29_v0, %v95_v34  ;;  %v972_v37 = vsub.f32 %v31_v1, %v97_v35 }
  0x94   :  { %v51_v38 = vpop.xlane.xlu0 %50  ;;  %v57_v39 = vpop.xlane.xlu1 %56 }
  0x95   :  { %v96_v40 = vmul.f32 0.03125, %v51_v38  ;;  %v98_v41 = vmul.f32 0.03125, %v57_v39  ;;  %v127_v42 = vmul.f32 %v970_v36, %v970_v36  ;;  %v129_v43 = vmul.f32 %v972_v37, %v972_v37 }
  0x97   :  { %v978_v44 = vsub.f32 %v30_v2, %v96_v40  ;;  %v980_v45 = vsub.f32 %v32_v5, %v98_v41  ;;  %v143_v46 = vsel %vm45_vm0, %v127_v42, 0.0  ;;  %v149_v49 = vsel %vm45_vm0, %v129_v43, 0.0 }
  0x98   :  { %144 = vadd.xlane.f32.xlu0 %v143_v46  ;;  %v60_v47 = vpop.xlane.xlu0 %59  ;;  %v63_v48 = vpop.xlane.xlu1 %62 }
  0x99   :  { %v99_v50 = vmul.f32 0.03125, %v60_v47  ;;  %v100_v51 = vmul.f32 0.03125, %v63_v48  ;;  %v128_v52 = vmul.f32 %v978_v44, %v978_v44  ;;  %v130_v53 = vmul.f32 %v980_v45, %v980_v45 }
  0x9b   :  { %v988_v54 = vsub.f32 %v33_v8, %v99_v50  ;;  %v990_v55 = vsub.f32 %v34_v9, %v100_v51  ;;  %v146_v56 = vsel %vm45_vm0, %v128_v52, 0.0  ;;  %v152_v59 = vsel %vm45_vm0, %v130_v53, 0.0  ;;  %v796_v53 = vld [vmem:[%s1318_s5] sm:$0xff]  }
  0x9c   :  { %150 = vadd.xlane.f32.xlu0 %v149_v49  ;;  %147 = vadd.xlane.f32.xlu1 %v146_v56  ;;  %v66_v57 = vpop.xlane.xlu0 %65  ;;  %v69_v58 = vpop.xlane.xlu1 %68  ;;  %v797_v56 = vld [vmem:[%s1317_s3 + $0x8] sm:$0xff]  }
  0x9d   :  { %v101_v60 = vmul.f32 0.03125, %v66_v57  ;;  %v102_v61 = vmul.f32 0.03125, %v69_v58  ;;  %v131_v62 = vmul.f32 %v988_v54, %v988_v54  ;;  %v132_v63 = vmul.f32 %v990_v55, %v990_v55  ;;  %775 = vmatprep.subr.bf16.mxu1 %v796_v53  ;;  %v798_v57 = vld [vmem:[%s1318_s5 + $0x8] sm:$0xff]  }
  0x9e   :  { %776 = vmatpush3.bf16.msra.mxu1 %v796_v53 }
  0x9f   :  { %v999_v0 = vsub.f32 %v903_v12, %v101_v60  ;;  %v1002_v1 = vsub.f32 %v908_v13, %v102_v61  ;;  %v155_v2 = vsel %vm45_vm0, %v131_v62, 0.0  ;;  %v158_v5 = vsel %vm45_vm0, %v132_v63, 0.0  ;;  %777 = vmatprep.subr.bf16.mxu1 %v798_v57 }
  0xa0   :  { %153 = vadd.xlane.f32.xlu1 %v152_v59  ;;  %156 = vadd.xlane.f32.xlu0 %v155_v2  ;;  %v72_v3 = vpop.xlane.xlu0 %71  ;;  %v75_v4 = vpop.xlane.xlu1 %74 }
  0xa1   :  { %v103_v6 = vmul.f32 0.03125, %v72_v3  ;;  %v104_v7 = vmul.f32 0.03125, %v75_v4  ;;  %v133_v8 = vmul.f32 %v999_v0, %v999_v0  ;;  %v134_v9 = vmul.f32 %v1002_v1, %v1002_v1 }
  0xa2   :  { %778 = vmatpush3.bf16.msra.mxu1 %v798_v57 }
  0xa3   :  { %v1011_v10 = vsub.f32 %v917_v16, %v103_v6  ;;  %v1014_v11 = vsub.f32 %v922_v17, %v104_v7  ;;  %v161_v12 = vsel %vm45_vm0, %v133_v8, 0.0  ;;  %v164_v15 = vsel %vm45_vm0, %v134_v9, 0.0 }
  0xa4   :  { %159 = vadd.xlane.f32.xlu1 %v158_v5  ;;  %162 = vadd.xlane.f32.xlu0 %v161_v12  ;;  %v78_v13 = vpop.xlane.xlu0 %77  ;;  %v81_v14 = vpop.xlane.xlu1 %80 }
  0xa5   :  { %v105_v18 = vmul.f32 0.03125, %v78_v13  ;;  %v106_v19 = vmul.f32 0.03125, %v81_v14  ;;  %v135_v22 = vmul.f32 %v1011_v10, %v1011_v10  ;;  %v136_v16 = vmul.f32 %v1014_v11, %v1014_v11 }
  0xa7   :  { %v1023_v23 = vsub.f32 %v931_v20, %v105_v18  ;;  %v1026_v17 = vsub.f32 %v936_v21, %v106_v19  ;;  %v167_v26 = vsel %vm45_vm0, %v135_v22, 0.0  ;;  %v170_v31 = vsel %vm45_vm0, %v136_v16, 0.0 }
  0xa8   :  { %165 = vadd.xlane.f32.xlu1 %v164_v15  ;;  %168 = vadd.xlane.f32.xlu0 %v167_v26  ;;  %v84_v27 = vpop.xlane.xlu0 %83  ;;  %v87_v30 = vpop.xlane.xlu1 %86 }
  0xa9   :  { %v107_v32 = vmul.f32 0.03125, %v84_v27  ;;  %v108_v33 = vmul.f32 0.03125, %v87_v30  ;;  %v137_v34 = vmul.f32 %v1023_v23, %v1023_v23  ;;  %v138_v20 = vmul.f32 %v1026_v17, %v1026_v17 }
  0xab   :  { %v1035_v35 = vsub.f32 %v945_v24, %v107_v32  ;;  %v1038_v21 = vsub.f32 %v950_v25, %v108_v33  ;;  %v173_v38 = vsel %vm45_vm0, %v137_v34, 0.0  ;;  %v176_v41 = vsel %vm45_vm0, %v138_v20, 0.0  ;;  %v1076_v33 = vld [vmem:[%s1319_s1] ss:$0 sm:$0xff] }
  0xac   :  { %171 = vadd.xlane.f32.xlu1 %v170_v31  ;;  %174 = vadd.xlane.f32.xlu0 %v173_v38  ;;  %v90_v39 = vpop.xlane.xlu0 %89  ;;  %v93_v40 = vpop.xlane.xlu1 %92 }
  0xad   :  { %v109_v42 = vmul.f32 0.03125, %v90_v39  ;;  %v110_v43 = vmul.f32 0.03125, %v93_v40  ;;  %v139_v46 = vmul.f32 %v1035_v35, %v1035_v35  ;;  %v140_v24 = vmul.f32 %v1038_v21, %v1038_v21 }
  0xaf   :  { %v1047_v47 = vsub.f32 %v959_v28, %v109_v42  ;;  %v1050_v25 = vsub.f32 %v964_v29, %v110_v43  ;;  %v179_v48 = vsel %vm45_vm0, %v139_v46, 0.0  ;;  %v182_v49 = vsel %vm45_vm0, %v140_v24, 0.0  ;;  %v795_v29 = vld [vmem:[%s1317_s3] sm:$0xff]  }
  0xb0   :  { %177 = vadd.xlane.f32.xlu1 %v176_v41  ;;  %180 = vadd.xlane.f32.xlu0 %v179_v48  ;;  %v1084_v48 = vld [vmem:[%s1320_s2] ss:$0 sm:$0xff] }
  0xb1   :  { %v141_v50 = vmul.f32 %v1047_v47, %v1047_v47  ;;  %v142_v51 = vmul.f32 %v1050_v25, %v1050_v25  ;;  %755 = vmatprep.subr.bf16.mxu0 %v795_v29 }
  0xb2   :  { %756 = vmatpush3.bf16.msra.mxu0 %v795_v29 }
  0xb3   :  { %v185_v52 = vsel %vm45_vm0, %v141_v50, 0.0  ;;  %v188_v28 = vsel %vm45_vm0, %v142_v51, 0.0  ;;  %757 = vmatprep.subr.bf16.mxu0 %v797_v56 }
  0xb4   :  { %183 = vadd.xlane.f32.xlu1 %v182_v49  ;;  %186 = vadd.xlane.f32.xlu0 %v185_v52 }
  0xb6   :  { %758 = vmatpush3.bf16.msra.mxu0 %v797_v56 }
  0xb8   :  { %189 = vadd.xlane.f32.xlu1 %v188_v28 }
 0x125   :  { %v145_v58 = vpop.xlane.xlu0 %144 }
 0x126   :  { %v191_v59 = vmul.f32 0.03125, %v145_v58 }
 0x128   :  { %v207_v60 = vadd.f32 1e-05, %v191_v59 }
 0x129   :  { %v148_v61 = vpop.xlane.xlu1 %147  ;;  %v151_v62 = vpop.xlane.xlu0 %150 }
 0x12a   :  { %799 = vrsqrt.f32 %v207_v60  ;;  %v192_v63 = vmul.f32 0.03125, %v148_v61  ;;  %v193_v2 = vmul.f32 0.03125, %v151_v62 }
 0x12c   :  { %v208_v3 = vadd.f32 1e-05, %v192_v63  ;;  %v209_v4 = vadd.f32 1e-05, %v193_v2 }
 0x12d   :  { %v154_v5 = vpop.xlane.xlu1 %153  ;;  %v157_v6 = vpop.xlane.xlu0 %156 }
 0x12e   :  { %801 = vrsqrt.f32 %v208_v3  ;;  %v194_v7 = vmul.f32 0.03125, %v154_v5  ;;  %v195_v8 = vmul.f32 0.03125, %v157_v6 }
 0x12f   :  { %803 = vrsqrt.f32 %v209_v4 }
 0x130   :  { %v210_v9 = vadd.f32 1e-05, %v194_v7  ;;  %v211_v12 = vadd.f32 1e-05, %v195_v8 }
 0x131   :  { %v160_v13 = vpop.xlane.xlu1 %159  ;;  %v163_v14 = vpop.xlane.xlu0 %162 }
 0x132   :  { %805 = vrsqrt.f32 %v210_v9  ;;  %v196_v15 = vmul.f32 0.03125, %v160_v13  ;;  %v197_v18 = vmul.f32 0.03125, %v163_v14 }
 0x133   :  { %807 = vrsqrt.f32 %v211_v12 }
 0x134   :  { %v800_v19 = vpop.eup %799  ;;  %v212_v22 = vadd.f32 1e-05, %v196_v15  ;;  %v213_v16 = vadd.f32 1e-05, %v197_v18 }
 0x135   :  { %v166_v26 = vpop.xlane.xlu1 %165  ;;  %v169_v27 = vpop.xlane.xlu0 %168  ;;  %v239_v30 = vmul.f32 %v800_v19, %v970_v36 }
 0x136   :  { %809 = vrsqrt.f32 %v212_v22  ;;  %v198_v31 = vmul.f32 0.03125, %v166_v26  ;;  %v199_v32 = vmul.f32 0.03125, %v169_v27 }
 0x137   :  { %811 = vrsqrt.f32 %v213_v16  ;;  %v262_v43 = vmul.f32 %v1076_v33, %v239_v30 }
 0x138   :  { %v802_v34 = vpop.eup %801  ;;  %v214_v20 = vadd.f32 1e-05, %v198_v31  ;;  %v215_v38 = vadd.f32 1e-05, %v199_v32 }
 0x139   :  { %v804_v39 = vpop.eup %803  ;;  %v172_v40 = vpop.xlane.xlu1 %171  ;;  %v240_v42 = vmul.f32 %v802_v34, %v978_v44 }
 0x13a   :  { %v175_v41 = vpop.xlane.xlu0 %174  ;;  %v241_v36 = vmul.f32 %v804_v39, %v972_v37  ;;  %813 = vrsqrt.f32 %v214_v20  ;;  %v200_v46 = vmul.f32 0.03125, %v172_v40  ;;  %v285_v37 = vadd.f32 %v1084_v48, %v262_v43 }
 0x13b   :  { %v201_v24 = vmul.f32 0.03125, %v175_v41  ;;  %815 = vrsqrt.f32 %v215_v38  ;;  %v263_v49 = vmul.f32 %v1076_v33, %v240_v42 }
 0x13c   :  { %v806_v50 = vpop.eup %805  ;;  %v216_v51 = vadd.f32 1e-05, %v200_v46  ;;  %v264_v57 = vmul.f32 %v1076_v33, %v241_v36 }
 0x13d   :  { %v217_v52 = vadd.f32 1e-05, %v201_v24  ;;  %v808_v28 = vpop.eup %807  ;;  %v242_v44 = vmul.f32 %v806_v50, %v980_v45  ;;  %v178_v29 = vpop.xlane.xlu1 %177  ;;  %v286_v56 = vadd.f32 %v1084_v48, %v263_v49 }
 0x13e   :  { %v181_v53 = vpop.xlane.xlu0 %180  ;;  %v243_v58 = vmul.f32 %v808_v28, %v988_v54  ;;  %817 = vrsqrt.f32 %v216_v51  ;;  %v202_v59 = vmul.f32 0.03125, %v178_v29  ;;  %v287_v7 = vadd.f32 %v1084_v48, %v264_v57 }
 0x13f   :  { %v203_v60 = vmul.f32 0.03125, %v181_v53  ;;  %819 = vrsqrt.f32 %v217_v52  ;;  %v301_v61 = vpack.c.bf16 %v286_v56, %v285_v37  ;;  %v265_v62 = vmul.f32 %v1076_v33, %v242_v44 }
 0x140   :  { %v810_v63 = vpop.eup %809  ;;  %v218_v2 = vadd.f32 1e-05, %v202_v59  ;;  %v266_v3 = vmul.f32 %v1076_v33, %v243_v58 }
 0x141   :  { %v219_v45 = vadd.f32 1e-05, %v203_v60  ;;  %v812_v4 = vpop.eup %811  ;;  %v244_v5 = vmul.f32 %v810_v63, %v990_v55  ;;  %v184_v6 = vpop.xlane.xlu1 %183  ;;  %759 = vmatprep.mubr.msk.bf16.mxu0 %vm45_vm0, %v301_v61  ;;  %779 = vmatprep.mubr.msk.bf16.mxu1 %vm45_vm0, %v301_v61  ;;  %v288_v8 = vadd.f32 %v1084_v48, %v265_v62 }
 0x142   :  { %v187_v54 = vpop.xlane.xlu0 %186  ;;  %v245_v9 = vmul.f32 %v812_v4, %v999_v0  ;;  %821 = vrsqrt.f32 %v218_v2  ;;  %v204_v12 = vmul.f32 0.03125, %v184_v6  ;;  %v289_v22 = vadd.f32 %v1084_v48, %v266_v3  ;;  %v1149_v4 = vld [vmem:[%s1321_s4] ss:$0 sm:$0xff] }
 0x143   :  { %v205_v13 = vmul.f32 0.03125, %v187_v54  ;;  %823 = vrsqrt.f32 %v219_v45  ;;  %v302_v14 = vpack.c.bf16 %v288_v8, %v287_v7  ;;  %v267_v15 = vmul.f32 %v1076_v33, %v244_v5 }
 0x144   :  { %v814_v55 = vpop.eup %813  ;;  %v220_v18 = vadd.f32 1e-05, %v204_v12  ;;  %v268_v30 = vmul.f32 %v1076_v33, %v245_v9 }
 0x145   :  { %v221_v19 = vadd.f32 1e-05, %v205_v13  ;;  %v816_v16 = vpop.eup %815  ;;  %v246_v26 = vmul.f32 %v814_v55, %v1002_v1  ;;  %v190_v27 = vpop.xlane.xlu1 %189  ;;  %760 = vmatmul.mubr.msk.bf16.vlgmr.msra.gmra.mrb[0].mxu0 %vm45_vm0, %v302_v14  ;;  %780 = vmatmul.mubr.msk.bf16.vlgmr.msra.gmra.mrb[0].mxu1 %vm45_vm0, %v302_v14  ;;  %v290_v0 = vadd.f32 %v1084_v48, %v267_v15 }
 0x146   :  { %v247_v31 = vmul.f32 %v816_v16, %v1011_v10  ;;  %825 = vrsqrt.f32 %v220_v18  ;;  %v206_v32 = vmul.f32 0.03125, %v190_v27  ;;  %v291_v42 = vadd.f32 %v1084_v48, %v268_v30 }
 0x147   :  { %827 = vrsqrt.f32 %v221_v19  ;;  %v303_v34 = vpack.c.bf16 %v290_v0, %v289_v22  ;;  %v269_v20 = vmul.f32 %v1076_v33, %v246_v26 }
 0x148   :  { %v818_v38 = vpop.eup %817  ;;  %v222_v39 = vadd.f32 1e-05, %v206_v32  ;;  %v270_v1 = vmul.f32 %v1076_v33, %v247_v31 }
 0x149   :  { %v820_v40 = vpop.eup %819  ;;  %v248_v41 = vmul.f32 %v818_v38, %v1014_v11  ;;  %763 = vmatprep.mubr.msk.bf16.mxu0 %vm45_vm0, %v303_v34  ;;  %783 = vmatprep.mubr.msk.bf16.mxu1 %vm45_vm0, %v303_v34  ;;  %v292_v10 = vadd.f32 %v1084_v48, %v269_v20 }
 0x14a   :  { %v249_v43 = vmul.f32 %v820_v40, %v1023_v23  ;;  %829 = vrsqrt.f32 %v222_v39  ;;  %v293_v49 = vadd.f32 %v1084_v48, %v270_v1 }
 0x14b   :  { %v304_v36 = vpack.c.bf16 %v292_v10, %v291_v42  ;;  %v271_v46 = vmul.f32 %v1076_v33, %v248_v41 }
 0x14c   :  { %v822_v24 = vpop.eup %821  ;;  %v272_v52 = vmul.f32 %v1076_v33, %v249_v43 }
 0x14d   :  { %v824_v50 = vpop.eup %823  ;;  %v250_v11 = vmul.f32 %v822_v24, %v1026_v17  ;;  %764 = vmatmul.mubr.msk.bf16.gmra.mrb[4].mxu0 %vm45_vm0, %v304_v36  ;;  %784 = vmatmul.mubr.msk.bf16.gmra.mrb[4].mxu1 %vm45_vm0, %v304_v36  ;;  %v294_v51 = vadd.f32 %v1084_v48, %v271_v46 }
 0x14e   :  { %v251_v23 = vmul.f32 %v824_v50, %v1035_v35  ;;  %v295_v17 = vadd.f32 %v1084_v48, %v272_v52 }
 0x14f   :  { %v305_v28 = vpack.c.bf16 %v294_v51, %v293_v49  ;;  %v273_v44 = vmul.f32 %v1076_v33, %v250_v11 }
 0x150   :  { %v826_v29 = vpop.eup %825  ;;  %v274_v53 = vmul.f32 %v1076_v33, %v251_v23 }
 0x151   :  { %v828_v37 = vpop.eup %827  ;;  %v252_v56 = vmul.f32 %v826_v29, %v1038_v21  ;;  %767 = vmatprep.mubr.msk.bf16.mxu0 %vm45_vm0, %v305_v28  ;;  %787 = vmatprep.mubr.msk.bf16.mxu1 %vm45_vm0, %v305_v28  ;;  %v296_v57 = vadd.f32 %v1084_v48, %v273_v44 }
 0x152   :  { %v253_v58 = vmul.f32 %v828_v37, %v1047_v47  ;;  %v297_v61 = vadd.f32 %v1084_v48, %v274_v53 }
 0x153   :  { %v306_v35 = vpack.c.bf16 %v296_v57, %v295_v17  ;;  %v275_v59 = vmul.f32 %v1076_v33, %v252_v56 }
 0x154   :  { %v830_v60 = vpop.eup %829  ;;  %v276_v63 = vmul.f32 %v1076_v33, %v253_v58 }
 0x155   :  { %v254_v62 = vmul.f32 %v830_v60, %v1050_v25  ;;  %768 = vmatmul.mubr.msk.bf16.gmra.mrb[8].mxu0 %vm45_vm0, %v306_v35  ;;  %788 = vmatmul.mubr.msk.bf16.gmra.mrb[8].mxu1 %vm45_vm0, %v306_v35  ;;  %v298_v21 = vadd.f32 %v1084_v48, %v275_v59 }
 0x156   :  { %v299_v47 = vadd.f32 %v1084_v48, %v276_v63 }
 0x157   :  { %v307_v2 = vpack.c.bf16 %v298_v21, %v297_v61  ;;  %v277_v45 = vmul.f32 %v1076_v33, %v254_v62  ;;  %v1154_v33 = vld [vmem:[%s1322_s6] ss:$0 sm:$0xff] }
 0x159   :  { %771 = vmatprep.mubr.msk.bf16.mxu0 %vm45_vm0, %v307_v2  ;;  %791 = vmatprep.mubr.msk.bf16.mxu1 %vm45_vm0, %v307_v2  ;;  %v300_v3 = vadd.f32 %v1084_v48, %v277_v45 }
 0x15b   :  { %v308_v25 = vpack.c.bf16 %v300_v3, %v299_v47 }
 0x15d   :  { %772 = vmatmul.mubr.msk.bf16.gmra.mrb[12].mxu0 %vm45_vm0, %v308_v25  ;;  %792 = vmatmul.mubr.msk.bf16.gmra.mrb[12].mxu1 %vm45_vm0, %v308_v25 }
 0x218   :  { %v761_v5 = vpop.f32.mrb[0].mxu0  ;;  %v781_v6 = vpop.f32.mrb[0].mxu1 }
 0x219   :  { %v399_v48 = vadd.f32 %v761_v5, %v1149_v4  ;;  %v600_v54 = vadd.f32 %v781_v6, %v1154_v33  ;;  %v390_v7 = vpop.f32.mrb[1].mxu0  ;;  %v591_v8 = vpop.f32.mrb[1].mxu1 }
 0x21a   :  { %v391_v9 = vadd.f32 %v1149_v4, %v390_v7  ;;  %v592_v12 = vadd.f32 %v1154_v33, %v591_v8  ;;  %v762_v13 = vpop.f32.mrb[2].mxu0  ;;  %v782_v14 = vpop.f32.mrb[2].mxu1 }
 0x21b   :  { %v721_v15 = vpack.c.bf16 %v399_v48, %v399_v48  ;;  %657 = vst.msk [vmem:[%s1323_s8 + $0x10] sm:$0xff] %vm654_vm1, %v600_v54  ;;  %v402_v55 = vadd.f32 %v762_v13, %v1149_v4  ;;  %v603_v18 = vadd.f32 %v782_v14, %v1154_v33  ;;  %v393_v19 = vpop.f32.mrb[3].mxu0  ;;  %v594_v22 = vpop.f32.mrb[3].mxu1 }
 0x21c   :  { %v719_v16 = vpack.c.bf16 %v391_v9, %v391_v9  ;;  %655 = vst.msk [vmem:[%s1323_s8] sm:$0xff] %vm654_vm1, %v592_v12  ;;  %v394_v26 = vadd.f32 %v1149_v4, %v393_v19  ;;  %v595_v27 = vadd.f32 %v1154_v33, %v594_v22 }
 0x21d   :  { %520 = vst.msk [vmem:[%s1324_s7 + $0x8] sm:$0xf] %vm517_vm2, %v721_v15  ;;  %v722_v0 = vpack.c.bf16 %v402_v55, %v402_v55 }
 0x21e   :  { %658 = vst.msk [vmem:[%s1323_s8 + $0x18] sm:$0xff] %vm654_vm1, %v603_v18  ;;  %v720_v30 = vpack.c.bf16 %v394_v26, %v394_v26  ;;  %656 = vst.msk [vmem:[%s1323_s8 + $0x8] sm:$0xff] %vm654_vm1, %v595_v27 }
 0x21f   :  { %518 = vst.msk [vmem:[%s1324_s7] sm:$0xf] %vm517_vm2, %v719_v16  ;;  %521 = vst.msk [vmem:[%s1324_s7 + $0xc] sm:$0xf] %vm517_vm2, %v722_v0 }
 0x220   :  { %519 = vst.msk [vmem:[%s1324_s7 + $0x4] sm:$0xf] %vm517_vm2, %v720_v30  ;;  %v765_v31 = vpop.f32.mrb[4].mxu0  ;;  %v785_v32 = vpop.f32.mrb[4].mxu1 }
 0x221   :  { %v415_v34 = vadd.f32 %v765_v31, %v1149_v4  ;;  %v616_v20 = vadd.f32 %v785_v32, %v1154_v33  ;;  %v406_v38 = vpop.f32.mrb[5].mxu0  ;;  %v607_v39 = vpop.f32.mrb[5].mxu1 }
 0x222   :  { %v407_v1 = vadd.f32 %v1149_v4, %v406_v38  ;;  %v608_v40 = vadd.f32 %v1154_v33, %v607_v39  ;;  %v766_v41 = vpop.f32.mrb[6].mxu0  ;;  %v786_v42 = vpop.f32.mrb[6].mxu1 }
 0x223   :  { %v725_v10 = vpack.c.bf16 %v415_v34, %v415_v34  ;;  %661 = vst.msk [vmem:[%s1323_s8 + $0x30] sm:$0xff] %vm654_vm1, %v616_v20  ;;  %v418_v43 = vadd.f32 %v766_v41, %v1149_v4  ;;  %v619_v36 = vadd.f32 %v786_v42, %v1154_v33  ;;  %v409_v46 = vpop.f32.mrb[7].mxu0  ;;  %v610_v24 = vpop.f32.mrb[7].mxu1 }
 0x224   :  { %v723_v49 = vpack.c.bf16 %v407_v1, %v407_v1  ;;  %659 = vst.msk [vmem:[%s1323_s8 + $0x20] sm:$0xff] %vm654_vm1, %v608_v40  ;;  %v410_v50 = vadd.f32 %v1149_v4, %v409_v46  ;;  %v611_v11 = vadd.f32 %v1154_v33, %v610_v24 }
 0x225   :  { %524 = vst.msk [vmem:[%s1324_s7 + $0x18] sm:$0xf] %vm517_vm2, %v725_v10  ;;  %v726_v51 = vpack.c.bf16 %v418_v43, %v418_v43 }
 0x226   :  { %662 = vst.msk [vmem:[%s1323_s8 + $0x38] sm:$0xff] %vm654_vm1, %v619_v36  ;;  %v724_v52 = vpack.c.bf16 %v410_v50, %v410_v50  ;;  %660 = vst.msk [vmem:[%s1323_s8 + $0x28] sm:$0xff] %vm654_vm1, %v611_v11 }
 0x227   :  { %522 = vst.msk [vmem:[%s1324_s7 + $0x10] sm:$0xf] %vm517_vm2, %v723_v49  ;;  %525 = vst.msk [vmem:[%s1324_s7 + $0x1c] sm:$0xf] %vm517_vm2, %v726_v51 }
 0x228   :  { %523 = vst.msk [vmem:[%s1324_s7 + $0x14] sm:$0xf] %vm517_vm2, %v724_v52  ;;  %v769_v23 = vpop.f32.mrb[8].mxu0  ;;  %v789_v28 = vpop.f32.mrb[8].mxu1 }
 0x229   :  { %v431_v44 = vadd.f32 %v769_v23, %v1149_v4  ;;  %v632_v29 = vadd.f32 %v789_v28, %v1154_v33  ;;  %v422_v53 = vpop.f32.mrb[9].mxu0  ;;  %v623_v37 = vpop.f32.mrb[9].mxu1 }
 0x22a   :  { %v423_v56 = vadd.f32 %v1149_v4, %v422_v53  ;;  %v624_v17 = vadd.f32 %v1154_v33, %v623_v37  ;;  %v770_v57 = vpop.f32.mrb[10].mxu0  ;;  %v790_v58 = vpop.f32.mrb[10].mxu1 }
 0x22b   :  { %v729_v35 = vpack.c.bf16 %v431_v44, %v431_v44  ;;  %665 = vst.msk [vmem:[%s1323_s8 + $0x50] sm:$0xff] %vm654_vm1, %v632_v29  ;;  %v434_v59 = vadd.f32 %v770_v57, %v1149_v4  ;;  %v635_v60 = vadd.f32 %v790_v58, %v1154_v33  ;;  %v425_v61 = vpop.f32.mrb[11].mxu0  ;;  %v626_v62 = vpop.f32.mrb[11].mxu1 }
 0x22c   :  { %v727_v21 = vpack.c.bf16 %v423_v56, %v423_v56  ;;  %663 = vst.msk [vmem:[%s1323_s8 + $0x40] sm:$0xff] %vm654_vm1, %v624_v17  ;;  %v426_v63 = vadd.f32 %v1149_v4, %v425_v61  ;;  %v627_v2 = vadd.f32 %v1154_v33, %v626_v62 }
 0x22d   :  { %528 = vst.msk [vmem:[%s1324_s7 + $0x28] sm:$0xf] %vm517_vm2, %v729_v35  ;;  %v730_v45 = vpack.c.bf16 %v434_v59, %v434_v59 }
 0x22e   :  { %666 = vst.msk [vmem:[%s1323_s8 + $0x58] sm:$0xff] %vm654_vm1, %v635_v60  ;;  %v728_v47 = vpack.c.bf16 %v426_v63, %v426_v63  ;;  %664 = vst.msk [vmem:[%s1323_s8 + $0x48] sm:$0xff] %vm654_vm1, %v627_v2 }
 0x22f   :  { %526 = vst.msk [vmem:[%s1324_s7 + $0x20] sm:$0xf] %vm517_vm2, %v727_v21  ;;  %529 = vst.msk [vmem:[%s1324_s7 + $0x2c] sm:$0xf] %vm517_vm2, %v730_v45 }
 0x230   :  { %527 = vst.msk [vmem:[%s1324_s7 + $0x24] sm:$0xf] %vm517_vm2, %v728_v47  ;;  %v773_v3 = vpop.f32.mrb[12].mxu0  ;;  %v793_v25 = vpop.f32.mrb[12].mxu1 }
 0x231   :  { %v447_v5 = vadd.f32 %v773_v3, %v1149_v4  ;;  %v648_v6 = vadd.f32 %v793_v25, %v1154_v33  ;;  %v438_v48 = vpop.f32.mrb[13].mxu0  ;;  %v639_v54 = vpop.f32.mrb[13].mxu1 }
 0x232   :  { %v439_v7 = vadd.f32 %v1149_v4, %v438_v48  ;;  %v640_v8 = vadd.f32 %v1154_v33, %v639_v54  ;;  %v774_v9 = vpop.f32.mrb[14].mxu0  ;;  %v794_v12 = vpop.f32.mrb[14].mxu1 }
 0x233   :  { %v733_v13 = vpack.c.bf16 %v447_v5, %v447_v5  ;;  %669 = vst.msk [vmem:[%s1323_s8 + $0x70] sm:$0xff] %vm654_vm1, %v648_v6  ;;  %v450_v14 = vadd.f32 %v774_v9, %v1149_v4  ;;  %v651_v15 = vadd.f32 %v794_v12, %v1154_v33  ;;  %v441_v55 = vpop.f32.mrb[15].mxu0  ;;  %v642_v18 = vpop.f32.mrb[15].mxu1 }
 0x234   :  { %v731_v19 = vpack.c.bf16 %v439_v7, %v439_v7  ;;  %667 = vst.msk [vmem:[%s1323_s8 + $0x60] sm:$0xff] %vm654_vm1, %v640_v8  ;;  %v442_v22 = vadd.f32 %v1149_v4, %v441_v55  ;;  %v643_v16 = vadd.f32 %v1154_v33, %v642_v18 }
 0x235   :  { %532 = vst.msk [vmem:[%s1324_s7 + $0x38] sm:$0xf] %vm517_vm2, %v733_v13  ;;  %v734_v26 = vpack.c.bf16 %v450_v14, %v450_v14 }
 0x236   :  { %670 = vst.msk [vmem:[%s1323_s8 + $0x78] sm:$0xff] %vm654_vm1, %v651_v15  ;;  %v732_v27 = vpack.c.bf16 %v442_v22, %v442_v22  ;;  %668 = vst.msk [vmem:[%s1323_s8 + $0x68] sm:$0xff] %vm654_vm1, %v643_v16 }
 0x237   :  { %530 = vst.msk [vmem:[%s1324_s7 + $0x30] sm:$0xf] %vm517_vm2, %v731_v19  ;;  %533 = vst.msk [vmem:[%s1324_s7 + $0x3c] sm:$0xf] %vm517_vm2, %v734_v26 }
 0x238   :  { %531 = vst.msk [vmem:[%s1324_s7 + $0x34] sm:$0xf] %vm517_vm2, %v732_v27 }

</bundles_post_ra>
